<compile_context>
chip_gen: v6e
topology: v6e:2x2x1
jax: 0.10.0
libtpu: 0.0.40
codegen_flags: <defaults>
</compile_context>

<pallas_src>
import functools

import jax
import jax.numpy as jnp
import numpy as np
from jax import lax
from jax.experimental import pallas as pl
from jax.experimental.pallas import tpu as pltpu


def _hash_u32(x):
    """lowbias32 integer hash: well-mixed stateless counter-based RNG."""
    x = x ^ (x >> 16)
    x = x * jnp.uint32(0x7FEB352D)
    x = x ^ (x >> 15)
    x = x * jnp.uint32(0x846CA68B)
    x = x ^ (x >> 16)
    return x


def _embedding_kernel(ids_ref, seed_ref, emb_hbm, pos_ref, out_ref,
                      emb_buf, sem, *, seq_len, seq_tile, d_model,
                      n_slots, keep_prob, training):
    """One grid step = one (seq-tile, batch) pair.

    Gathers `seq_tile` embedding rows from the HBM table with up to `n_slots`
    DMAs in flight, adds the resident positional tile, applies stateless
    dropout on the whole tile, writes one dense (1, seq_tile, d_model) block.
    """
    st = pl.program_id(0)
    b = pl.program_id(1)
    base = b * seq_len + st * seq_tile          # flat offset into (B*S,) ids

    def start_row(t):
        row = ids_ref[base + t]
        pltpu.make_async_copy(emb_hbm.at[pl.ds(row, 1)],
                              emb_buf.at[pl.ds(t, 1)],
                              sem.at[t % n_slots]).start()

    def wait_row(t):
        # src/dst here only convey the copy size; the semaphore slot matters.
        pltpu.make_async_copy(emb_hbm.at[pl.ds(0, 1)],
                              emb_buf.at[pl.ds(0, 1)],
                              sem.at[t % n_slots]).wait()

    # Prime the gather pipeline with n_slots outstanding row copies.
    @pl.loop(0, n_slots, unroll=True)
    def _(t):
        start_row(t)

    # Steady state: retire row t, immediately refill its semaphore slot.
    @pl.loop(0, seq_tile)
    def _(t):
        wait_row(t)

        @pl.when(t + n_slots < seq_tile)
        def _():
            start_row(t + n_slots)

    # Whole-tile compute: gathered rows + positional encoding (f32 accumulate).
    val = emb_buf[...].astype(jnp.float32) + pos_ref[...].astype(jnp.float32)

    if training and keep_prob < 1.0:
        # Stateless dropout: hash(global element index, seed) -> keep mask,
        # computed once for the whole (seq_tile, d_model) tile.
        row = lax.broadcasted_iota(jnp.int32, (seq_tile, d_model), 0)
        lane = lax.broadcasted_iota(jnp.int32, (seq_tile, d_model), 1)
        # NOTE: counter wraps mod 2^32 when B*S*D approaches 2^32 (statistical
        # decorrelation concern only, not a functional one).
        ctr = ((base + row) * d_model + lane).astype(jnp.uint32)
        ctr = ctr + seed_ref[0].astype(jnp.uint32) * jnp.uint32(0x9E3779B9)
        bits = _hash_u32(ctr)
        # Top 24 bits as a non-negative int32 vs a 24-bit threshold (signed
        # compare keeps a proven, portable lowering path).
        r24 = (bits >> 8).astype(jnp.int32)
        thresh = jnp.int32(int(round(keep_prob * float(1 << 24))))
        keep = r24 < thresh
        # Inverted-scale dropout, scale fused into one multiply.
        val = jnp.where(keep, val, 0.0) * jnp.float32(1.0 / keep_prob)

    out_ref[0] = val.astype(out_ref.dtype)


def _pick_seq_tile(seq_len, d_model, emb_bytes, pos_bytes, out_bytes,
                   budget_bytes=16 * 1024 * 1024):
    """Largest seq tile dividing seq_len that fits the VMEM budget.

    Budget counts the gather scratch once and double-buffered pos/out blocks,
    keeping headroom for v7x's 64 MiB physical / 32 MiB scoped VMEM.
    """
    per_row = d_model * (emb_bytes + 2 * pos_bytes + 2 * out_bytes)
    candidates = [t for t in (1024, 512, 256, 128, 64, 32, 16, 8)
                  if seq_len % t == 0]
    for t in candidates:
        if t * per_row <= budget_bytes:
            return t
    return candidates[-1] if candidates else seq_len


def transformer_embedding(tok_ids, emb_table, pos_enc, seed,
                          drop_prob=0.5, training=True, out_dtype=None):
    """dropout(pos_emb(x) + tok_emb(x)) — forward of the PyTorch module."""
    B, S = tok_ids.shape
    V, D = emb_table.shape
    assert pos_enc.shape == (S, D)
    assert 0.0 <= drop_prob < 1.0
    keep_prob = 1.0 - drop_prob
    out_dtype = emb_table.dtype if out_dtype is None else jnp.dtype(out_dtype)

    eb = jnp.dtype(emb_table.dtype).itemsize
    pb = jnp.dtype(pos_enc.dtype).itemsize
    ob = jnp.dtype(out_dtype).itemsize
    ts = _pick_seq_tile(S, D, eb, pb, ob)
    n_st = S // ts
    n_slots = max(1, min(8, ts))      # outstanding row-gather DMAs per tile

    # ids drive the in-kernel DMA gather; clamp so a bad id can never cause an
    # out-of-bounds table access (PyTorch nn.Embedding would raise instead).
    ids = jnp.clip(tok_ids.astype(jnp.int32), 0, V - 1).reshape(B * S)
    seed = jnp.asarray(seed, dtype=jnp.int32).reshape((1,))

    kernel = functools.partial(
        _embedding_kernel, seq_len=S, seq_tile=ts, d_model=D,
        n_slots=n_slots, keep_prob=keep_prob, training=training)

    grid_spec = pltpu.PrefetchScalarGridSpec(
        num_scalar_prefetch=2,                  # ids, seed -> SMEM
        grid=(n_st, B),                         # seq-tile outer, batch inner:
                                                # pos tile DMA'd once per tile
        in_specs=[
            pl.BlockSpec(memory_space=pl.ANY),  # embedding table stays in HBM
            pl.BlockSpec((ts, D), lambda st, b, ids_s, sd: (st, 0)),
        ],
        out_specs=pl.BlockSpec((1, ts, D),
                               lambda st, b, ids_s, sd: (b, st, 0)),
        scratch_shapes=[
            pltpu.VMEM((ts, D), emb_table.dtype),   # row-gather buffer
            pltpu.SemaphoreType.DMA((n_slots,)),
        ],
    )

    bytes_accessed = B * S * D * (eb + ob) + S * D * pb
    out = pl.pallas_call(
        kernel,
        out_shape=jax.ShapeDtypeStruct((B, S, D), out_dtype),
        grid_spec=grid_spec,
        compiler_params=pltpu.CompilerParams(
            dimension_semantics=("parallel", "parallel"),
            vmem_limit_bytes=48 * 1024 * 1024),
        cost_estimate=pl.CostEstimate(
            flops=2 * B * S * D, transcendentals=0,
            bytes_accessed=bytes_accessed),
    )(ids, seed, emb_table, pos_enc)
    return out


def make_positional_encoding(seq_len, d_model):
    """Standard sinusoidal positional encoding, shape (seq_len, d_model)."""
    pos = np.arange(seq_len, dtype=np.float32)[:, None]                 # (S, 1)
    two_i = np.arange(0, d_model, 2, dtype=np.float32)[None, :]         # (1, D/2)
    angle = pos / np.power(10000.0, two_i / d_model)
    pe = np.zeros((seq_len, d_model), dtype=np.float32)
    pe[:, 0::2] = np.sin(angle)
    pe[:, 1::2] = np.cos(angle)
    return jnp.asarray(pe)


if __name__ == "__main__":
    # Small shapes consistent with the module's forward.
    batch, seq_len, d_model, vocab_size = 2, 8, 32, 64
    drop_prob = 0.5

    key = jax.random.PRNGKey(0)
    k_emb, k_ids = jax.random.split(key)

    # Deterministic parameter init (nn.Embedding ~ N(0,1); padding_idx=1 row zeroed).
    emb_table = jax.random.normal(k_emb, (vocab_size, d_model), dtype=jnp.float32)
    emb_table = emb_table.at[1].set(0.0)
    pos_enc = make_positional_encoding(seq_len, d_model)

    tok_ids = jax.random.randint(k_ids, (batch, seq_len), 0, vocab_size,
                                 dtype=jnp.int32)
    seed = jnp.array([0], dtype=jnp.int32)

    # Eval mode must match tok_emb + pos_emb exactly.
    out_eval = transformer_embedding(tok_ids, emb_table, pos_enc, seed,
                                     drop_prob=drop_prob, training=False)
    jax.block_until_ready(out_eval)
    ref = np.asarray(emb_table)[np.asarray(tok_ids)] + np.asarray(pos_enc)[None]
    np.testing.assert_allclose(np.asarray(out_eval), ref, rtol=1e-5, atol=1e-5)

    # Training mode: every element is either dropped (0) or scaled by 1/keep_prob.
    out_train = transformer_embedding(tok_ids, emb_table, pos_enc, seed,
                                      drop_prob=drop_prob, training=True)
    jax.block_until_ready(out_train)
    out_train_np = np.asarray(out_train)
    assert out_train_np.shape == (batch, seq_len, d_model)
    assert out_train_np.dtype == np.float32
    scaled = ref * (1.0 / (1.0 - drop_prob))
    ok = np.isclose(out_train_np, 0.0) | np.isclose(out_train_np, scaled,
                                                    rtol=1e-5, atol=1e-5)
    assert bool(np.all(ok)), "training output not consistent with dropout(ref)"
    keep_rate = float(np.mean(~np.isclose(out_train_np, 0.0)))
    assert 0.2 < keep_rate < 0.8, f"implausible dropout keep rate {keep_rate}"

    print("KERNEL_OK")
</pallas_src>

<mosaic_0001>
module attributes {stable_mosaic.version = 11 : i64} {
  func.func @_embedding_kernel(%arg0: i32, %arg1: i32, %arg2: memref<16xi32, #tpu.memory_space<smem>>, %arg3: memref<1xi32, #tpu.memory_space<smem>>, %arg4: memref<64x32xf32, #tpu.memory_space<any>>, %arg5: memref<8x32xf32, #tpu.memory_space<vmem>>, %arg6: memref<1x8x32xf32, #tpu.memory_space<vmem>>, %arg7: memref<8x32xf32, #tpu.memory_space<vmem>>, %arg8: memref<8x!tpu.dma_semaphore, #tpu.memory_space<semaphore_mem>>) attributes {dimension_semantics = [#tpu.dimension_semantics<parallel>, #tpu.dimension_semantics<parallel>], iteration_bounds = array<i64: 1, 2>, scalar_prefetch = 2 : i64, scratch_operands = 2 : i64, tpu.core_type = #tpu.core_type<tc>, window_params = [{}, {transform_indices = @transform_1, window_bounds = array<i64: 8, 32>}, {transform_indices = @transform_2, window_bounds = array<i64: 1, 8, 32>}]} {
    %c8_i32 = arith.constant 8 : i32
    %0 = arith.muli %arg1, %c8_i32 : i32
    %c8_i32_0 = arith.constant 8 : i32
    %1 = arith.muli %arg0, %c8_i32_0 : i32
    %2 = arith.addi %0, %1 : i32
    %c0_i32 = arith.constant 0 : i32
    %c1_i32 = arith.constant 1 : i32
    %3 = arith.muli %c0_i32, %c1_i32 : i32
    %c0_i32_1 = arith.constant 0 : i32
    %4 = arith.addi %c0_i32_1, %3 : i32
    %5 = arith.addi %2, %4 : i32
    %6 = arith.index_cast %5 : i32 to index
    %7 = memref.load %arg2[%6] : memref<16xi32, #tpu.memory_space<smem>>
    %c8_i32_2 = arith.constant 8 : i32
    %c0_i32_3 = arith.constant 0 : i32
    %8 = arith.cmpi eq, %c8_i32_2, %c0_i32_3 : i32
    %c1_i32_4 = arith.constant 1 : i32
    %9 = arith.select %8, %c1_i32_4, %c8_i32_2 : i32
    %10 = arith.remsi %4, %9 : i32
    %c0_i32_5 = arith.constant 0 : i32
    %11 = arith.cmpi ne, %10, %c0_i32_5 : i32
    %c0_i32_6 = arith.constant 0 : i32
    %12 = arith.cmpi slt, %10, %c0_i32_6 : i32
    %c0_i32_7 = arith.constant 0 : i32
    %13 = arith.cmpi slt, %9, %c0_i32_7 : i32
    %14 = arith.xori %12, %13 : i1
    %15 = arith.andi %14, %11 : i1
    %16 = arith.addi %10, %9 : i32
    %17 = arith.select %15, %16, %10 : i32
    %c0_i32_8 = arith.constant 0 : i32
    %18 = tpu.memref_slice %arg4[%7, %c0_i32_8] : memref<64x32xf32, #tpu.memory_space<any>> -> memref<1x32xf32, #tpu.memory_space<any>>
    %c0_i32_9 = arith.constant 0 : i32
    %19 = tpu.memref_slice %arg7[%4, %c0_i32_9] : memref<8x32xf32, #tpu.memory_space<vmem>> -> memref<1x32xf32, #tpu.memory_space<vmem>>
    %20 = tpu.memref_slice %arg8[%17] : memref<8x!tpu.dma_semaphore, #tpu.memory_space<semaphore_mem>> -> memref<1x!tpu.dma_semaphore, #tpu.memory_space<semaphore_mem>>
    %21 = tpu.memref_squeeze %20 : memref<1x!tpu.dma_semaphore, #tpu.memory_space<semaphore_mem>> -> memref<!tpu.dma_semaphore, #tpu.memory_space<semaphore_mem>>
    tpu.enqueue_dma source(%18 : memref<1x32xf32, #tpu.memory_space<any>>) target(%19 : memref<1x32xf32, #tpu.memory_space<vmem>>) target_semaphore(%21 : memref<!tpu.dma_semaphore, #tpu.memory_space<semaphore_mem>>)
    %c1_i32_10 = arith.constant 1 : i32
    %c1_i32_11 = arith.constant 1 : i32
    %22 = arith.muli %c1_i32_10, %c1_i32_11 : i32
    %c0_i32_12 = arith.constant 0 : i32
    %23 = arith.addi %c0_i32_12, %22 : i32
    %24 = arith.addi %2, %23 : i32
    %25 = arith.index_cast %24 : i32 to index
    %26 = memref.load %arg2[%25] : memref<16xi32, #tpu.memory_space<smem>>
    %c8_i32_13 = arith.constant 8 : i32
    %c0_i32_14 = arith.constant 0 : i32
    %27 = arith.cmpi eq, %c8_i32_13, %c0_i32_14 : i32
    %c1_i32_15 = arith.constant 1 : i32
    %28 = arith.select %27, %c1_i32_15, %c8_i32_13 : i32
    %29 = arith.remsi %23, %28 : i32
    %c0_i32_16 = arith.constant 0 : i32
    %30 = arith.cmpi ne, %29, %c0_i32_16 : i32
    %c0_i32_17 = arith.constant 0 : i32
    %31 = arith.cmpi slt, %29, %c0_i32_17 : i32
    %c0_i32_18 = arith.constant 0 : i32
    %32 = arith.cmpi slt, %28, %c0_i32_18 : i32
    %33 = arith.xori %31, %32 : i1
    %34 = arith.andi %33, %30 : i1
    %35 = arith.addi %29, %28 : i32
    %36 = arith.select %34, %35, %29 : i32
    %c0_i32_19 = arith.constant 0 : i32
    %37 = tpu.memref_slice %arg4[%26, %c0_i32_19] : memref<64x32xf32, #tpu.memory_space<any>> -> memref<1x32xf32, #tpu.memory_space<any>>
    %c0_i32_20 = arith.constant 0 : i32
    %38 = tpu.memref_slice %arg7[%23, %c0_i32_20] : memref<8x32xf32, #tpu.memory_space<vmem>> -> memref<1x32xf32, #tpu.memory_space<vmem>>
    %39 = tpu.memref_slice %arg8[%36] : memref<8x!tpu.dma_semaphore, #tpu.memory_space<semaphore_mem>> -> memref<1x!tpu.dma_semaphore, #tpu.memory_space<semaphore_mem>>
    %40 = tpu.memref_squeeze %39 : memref<1x!tpu.dma_semaphore, #tpu.memory_space<semaphore_mem>> -> memref<!tpu.dma_semaphore, #tpu.memory_space<semaphore_mem>>
    tpu.enqueue_dma source(%37 : memref<1x32xf32, #tpu.memory_space<any>>) target(%38 : memref<1x32xf32, #tpu.memory_space<vmem>>) target_semaphore(%40 : memref<!tpu.dma_semaphore, #tpu.memory_space<semaphore_mem>>)
    %c2_i32 = arith.constant 2 : i32
    %c1_i32_21 = arith.constant 1 : i32
    %41 = arith.muli %c2_i32, %c1_i32_21 : i32
    %c0_i32_22 = arith.constant 0 : i32
    %42 = arith.addi %c0_i32_22, %41 : i32
    %43 = arith.addi %2, %42 : i32
    %44 = arith.index_cast %43 : i32 to index
    %45 = memref.load %arg2[%44] : memref<16xi32, #tpu.memory_space<smem>>
    %c8_i32_23 = arith.constant 8 : i32
    %c0_i32_24 = arith.constant 0 : i32
    %46 = arith.cmpi eq, %c8_i32_23, %c0_i32_24 : i32
    %c1_i32_25 = arith.constant 1 : i32
    %47 = arith.select %46, %c1_i32_25, %c8_i32_23 : i32
    %48 = arith.remsi %42, %47 : i32
    %c0_i32_26 = arith.constant 0 : i32
    %49 = arith.cmpi ne, %48, %c0_i32_26 : i32
    %c0_i32_27 = arith.constant 0 : i32
    %50 = arith.cmpi slt, %48, %c0_i32_27 : i32
    %c0_i32_28 = arith.constant 0 : i32
    %51 = arith.cmpi slt, %47, %c0_i32_28 : i32
    %52 = arith.xori %50, %51 : i1
    %53 = arith.andi %52, %49 : i1
    %54 = arith.addi %48, %47 : i32
    %55 = arith.select %53, %54, %48 : i32
    %c0_i32_29 = arith.constant 0 : i32
    %56 = tpu.memref_slice %arg4[%45, %c0_i32_29] : memref<64x32xf32, #tpu.memory_space<any>> -> memref<1x32xf32, #tpu.memory_space<any>>
    %c0_i32_30 = arith.constant 0 : i32
    %57 = tpu.memref_slice %arg7[%42, %c0_i32_30] : memref<8x32xf32, #tpu.memory_space<vmem>> -> memref<1x32xf32, #tpu.memory_space<vmem>>
    %58 = tpu.memref_slice %arg8[%55] : memref<8x!tpu.dma_semaphore, #tpu.memory_space<semaphore_mem>> -> memref<1x!tpu.dma_semaphore, #tpu.memory_space<semaphore_mem>>
    %59 = tpu.memref_squeeze %58 : memref<1x!tpu.dma_semaphore, #tpu.memory_space<semaphore_mem>> -> memref<!tpu.dma_semaphore, #tpu.memory_space<semaphore_mem>>
    tpu.enqueue_dma source(%56 : memref<1x32xf32, #tpu.memory_space<any>>) target(%57 : memref<1x32xf32, #tpu.memory_space<vmem>>) target_semaphore(%59 : memref<!tpu.dma_semaphore, #tpu.memory_space<semaphore_mem>>)
    %c3_i32 = arith.constant 3 : i32
    %c1_i32_31 = arith.constant 1 : i32
    %60 = arith.muli %c3_i32, %c1_i32_31 : i32
    %c0_i32_32 = arith.constant 0 : i32
    %61 = arith.addi %c0_i32_32, %60 : i32
    %62 = arith.addi %2, %61 : i32
    %63 = arith.index_cast %62 : i32 to index
    %64 = memref.load %arg2[%63] : memref<16xi32, #tpu.memory_space<smem>>
    %c8_i32_33 = arith.constant 8 : i32
    %c0_i32_34 = arith.constant 0 : i32
    %65 = arith.cmpi eq, %c8_i32_33, %c0_i32_34 : i32
    %c1_i32_35 = arith.constant 1 : i32
    %66 = arith.select %65, %c1_i32_35, %c8_i32_33 : i32
    %67 = arith.remsi %61, %66 : i32
    %c0_i32_36 = arith.constant 0 : i32
    %68 = arith.cmpi ne, %67, %c0_i32_36 : i32
    %c0_i32_37 = arith.constant 0 : i32
    %69 = arith.cmpi slt, %67, %c0_i32_37 : i32
    %c0_i32_38 = arith.constant 0 : i32
    %70 = arith.cmpi slt, %66, %c0_i32_38 : i32
    %71 = arith.xori %69, %70 : i1
    %72 = arith.andi %71, %68 : i1
    %73 = arith.addi %67, %66 : i32
    %74 = arith.select %72, %73, %67 : i32
    %c0_i32_39 = arith.constant 0 : i32
    %75 = tpu.memref_slice %arg4[%64, %c0_i32_39] : memref<64x32xf32, #tpu.memory_space<any>> -> memref<1x32xf32, #tpu.memory_space<any>>
    %c0_i32_40 = arith.constant 0 : i32
    %76 = tpu.memref_slice %arg7[%61, %c0_i32_40] : memref<8x32xf32, #tpu.memory_space<vmem>> -> memref<1x32xf32, #tpu.memory_space<vmem>>
    %77 = tpu.memref_slice %arg8[%74] : memref<8x!tpu.dma_semaphore, #tpu.memory_space<semaphore_mem>> -> memref<1x!tpu.dma_semaphore, #tpu.memory_space<semaphore_mem>>
    %78 = tpu.memref_squeeze %77 : memref<1x!tpu.dma_semaphore, #tpu.memory_space<semaphore_mem>> -> memref<!tpu.dma_semaphore, #tpu.memory_space<semaphore_mem>>
    tpu.enqueue_dma source(%75 : memref<1x32xf32, #tpu.memory_space<any>>) target(%76 : memref<1x32xf32, #tpu.memory_space<vmem>>) target_semaphore(%78 : memref<!tpu.dma_semaphore, #tpu.memory_space<semaphore_mem>>)
    %c4_i32 = arith.constant 4 : i32
    %c1_i32_41 = arith.constant 1 : i32
    %79 = arith.muli %c4_i32, %c1_i32_41 : i32
    %c0_i32_42 = arith.constant 0 : i32
    %80 = arith.addi %c0_i32_42, %79 : i32
    %81 = arith.addi %2, %80 : i32
    %82 = arith.index_cast %81 : i32 to index
    %83 = memref.load %arg2[%82] : memref<16xi32, #tpu.memory_space<smem>>
    %c8_i32_43 = arith.constant 8 : i32
    %c0_i32_44 = arith.constant 0 : i32
    %84 = arith.cmpi eq, %c8_i32_43, %c0_i32_44 : i32
    %c1_i32_45 = arith.constant 1 : i32
    %85 = arith.select %84, %c1_i32_45, %c8_i32_43 : i32
    %86 = arith.remsi %80, %85 : i32
    %c0_i32_46 = arith.constant 0 : i32
    %87 = arith.cmpi ne, %86, %c0_i32_46 : i32
    %c0_i32_47 = arith.constant 0 : i32
    %88 = arith.cmpi slt, %86, %c0_i32_47 : i32
    %c0_i32_48 = arith.constant 0 : i32
    %89 = arith.cmpi slt, %85, %c0_i32_48 : i32
    %90 = arith.xori %88, %89 : i1
    %91 = arith.andi %90, %87 : i1
    %92 = arith.addi %86, %85 : i32
    %93 = arith.select %91, %92, %86 : i32
    %c0_i32_49 = arith.constant 0 : i32
    %94 = tpu.memref_slice %arg4[%83, %c0_i32_49] : memref<64x32xf32, #tpu.memory_space<any>> -> memref<1x32xf32, #tpu.memory_space<any>>
    %c0_i32_50 = arith.constant 0 : i32
    %95 = tpu.memref_slice %arg7[%80, %c0_i32_50] : memref<8x32xf32, #tpu.memory_space<vmem>> -> memref<1x32xf32, #tpu.memory_space<vmem>>
    %96 = tpu.memref_slice %arg8[%93] : memref<8x!tpu.dma_semaphore, #tpu.memory_space<semaphore_mem>> -> memref<1x!tpu.dma_semaphore, #tpu.memory_space<semaphore_mem>>
    %97 = tpu.memref_squeeze %96 : memref<1x!tpu.dma_semaphore, #tpu.memory_space<semaphore_mem>> -> memref<!tpu.dma_semaphore, #tpu.memory_space<semaphore_mem>>
    tpu.enqueue_dma source(%94 : memref<1x32xf32, #tpu.memory_space<any>>) target(%95 : memref<1x32xf32, #tpu.memory_space<vmem>>) target_semaphore(%97 : memref<!tpu.dma_semaphore, #tpu.memory_space<semaphore_mem>>)
    %c5_i32 = arith.constant 5 : i32
    %c1_i32_51 = arith.constant 1 : i32
    %98 = arith.muli %c5_i32, %c1_i32_51 : i32
    %c0_i32_52 = arith.constant 0 : i32
    %99 = arith.addi %c0_i32_52, %98 : i32
    %100 = arith.addi %2, %99 : i32
    %101 = arith.index_cast %100 : i32 to index
    %102 = memref.load %arg2[%101] : memref<16xi32, #tpu.memory_space<smem>>
    %c8_i32_53 = arith.constant 8 : i32
    %c0_i32_54 = arith.constant 0 : i32
    %103 = arith.cmpi eq, %c8_i32_53, %c0_i32_54 : i32
    %c1_i32_55 = arith.constant 1 : i32
    %104 = arith.select %103, %c1_i32_55, %c8_i32_53 : i32
    %105 = arith.remsi %99, %104 : i32
    %c0_i32_56 = arith.constant 0 : i32
    %106 = arith.cmpi ne, %105, %c0_i32_56 : i32
    %c0_i32_57 = arith.constant 0 : i32
    %107 = arith.cmpi slt, %105, %c0_i32_57 : i32
    %c0_i32_58 = arith.constant 0 : i32
    %108 = arith.cmpi slt, %104, %c0_i32_58 : i32
    %109 = arith.xori %107, %108 : i1
    %110 = arith.andi %109, %106 : i1
    %111 = arith.addi %105, %104 : i32
    %112 = arith.select %110, %111, %105 : i32
    %c0_i32_59 = arith.constant 0 : i32
    %113 = tpu.memref_slice %arg4[%102, %c0_i32_59] : memref<64x32xf32, #tpu.memory_space<any>> -> memref<1x32xf32, #tpu.memory_space<any>>
    %c0_i32_60 = arith.constant 0 : i32
    %114 = tpu.memref_slice %arg7[%99, %c0_i32_60] : memref<8x32xf32, #tpu.memory_space<vmem>> -> memref<1x32xf32, #tpu.memory_space<vmem>>
    %115 = tpu.memref_slice %arg8[%112] : memref<8x!tpu.dma_semaphore, #tpu.memory_space<semaphore_mem>> -> memref<1x!tpu.dma_semaphore, #tpu.memory_space<semaphore_mem>>
    %116 = tpu.memref_squeeze %115 : memref<1x!tpu.dma_semaphore, #tpu.memory_space<semaphore_mem>> -> memref<!tpu.dma_semaphore, #tpu.memory_space<semaphore_mem>>
    tpu.enqueue_dma source(%113 : memref<1x32xf32, #tpu.memory_space<any>>) target(%114 : memref<1x32xf32, #tpu.memory_space<vmem>>) target_semaphore(%116 : memref<!tpu.dma_semaphore, #tpu.memory_space<semaphore_mem>>)
    %c6_i32 = arith.constant 6 : i32
    %c1_i32_61 = arith.constant 1 : i32
    %117 = arith.muli %c6_i32, %c1_i32_61 : i32
    %c0_i32_62 = arith.constant 0 : i32
    %118 = arith.addi %c0_i32_62, %117 : i32
    %119 = arith.addi %2, %118 : i32
    %120 = arith.index_cast %119 : i32 to index
    %121 = memref.load %arg2[%120] : memref<16xi32, #tpu.memory_space<smem>>
    %c8_i32_63 = arith.constant 8 : i32
    %c0_i32_64 = arith.constant 0 : i32
    %122 = arith.cmpi eq, %c8_i32_63, %c0_i32_64 : i32
    %c1_i32_65 = arith.constant 1 : i32
    %123 = arith.select %122, %c1_i32_65, %c8_i32_63 : i32
    %124 = arith.remsi %118, %123 : i32
    %c0_i32_66 = arith.constant 0 : i32
    %125 = arith.cmpi ne, %124, %c0_i32_66 : i32
    %c0_i32_67 = arith.constant 0 : i32
    %126 = arith.cmpi slt, %124, %c0_i32_67 : i32
    %c0_i32_68 = arith.constant 0 : i32
    %127 = arith.cmpi slt, %123, %c0_i32_68 : i32
    %128 = arith.xori %126, %127 : i1
    %129 = arith.andi %128, %125 : i1
    %130 = arith.addi %124, %123 : i32
    %131 = arith.select %129, %130, %124 : i32
    %c0_i32_69 = arith.constant 0 : i32
    %132 = tpu.memref_slice %arg4[%121, %c0_i32_69] : memref<64x32xf32, #tpu.memory_space<any>> -> memref<1x32xf32, #tpu.memory_space<any>>
    %c0_i32_70 = arith.constant 0 : i32
    %133 = tpu.memref_slice %arg7[%118, %c0_i32_70] : memref<8x32xf32, #tpu.memory_space<vmem>> -> memref<1x32xf32, #tpu.memory_space<vmem>>
    %134 = tpu.memref_slice %arg8[%131] : memref<8x!tpu.dma_semaphore, #tpu.memory_space<semaphore_mem>> -> memref<1x!tpu.dma_semaphore, #tpu.memory_space<semaphore_mem>>
    %135 = tpu.memref_squeeze %134 : memref<1x!tpu.dma_semaphore, #tpu.memory_space<semaphore_mem>> -> memref<!tpu.dma_semaphore, #tpu.memory_space<semaphore_mem>>
    tpu.enqueue_dma source(%132 : memref<1x32xf32, #tpu.memory_space<any>>) target(%133 : memref<1x32xf32, #tpu.memory_space<vmem>>) target_semaphore(%135 : memref<!tpu.dma_semaphore, #tpu.memory_space<semaphore_mem>>)
    %c7_i32 = arith.constant 7 : i32
    %c1_i32_71 = arith.constant 1 : i32
    %136 = arith.muli %c7_i32, %c1_i32_71 : i32
    %c0_i32_72 = arith.constant 0 : i32
    %137 = arith.addi %c0_i32_72, %136 : i32
    %138 = arith.addi %2, %137 : i32
    %139 = arith.index_cast %138 : i32 to index
    %140 = memref.load %arg2[%139] : memref<16xi32, #tpu.memory_space<smem>>
    %c8_i32_73 = arith.constant 8 : i32
    %c0_i32_74 = arith.constant 0 : i32
    %141 = arith.cmpi eq, %c8_i32_73, %c0_i32_74 : i32
    %c1_i32_75 = arith.constant 1 : i32
    %142 = arith.select %141, %c1_i32_75, %c8_i32_73 : i32
    %143 = arith.remsi %137, %142 : i32
    %c0_i32_76 = arith.constant 0 : i32
    %144 = arith.cmpi ne, %143, %c0_i32_76 : i32
    %c0_i32_77 = arith.constant 0 : i32
    %145 = arith.cmpi slt, %143, %c0_i32_77 : i32
    %c0_i32_78 = arith.constant 0 : i32
    %146 = arith.cmpi slt, %142, %c0_i32_78 : i32
    %147 = arith.xori %145, %146 : i1
    %148 = arith.andi %147, %144 : i1
    %149 = arith.addi %143, %142 : i32
    %150 = arith.select %148, %149, %143 : i32
    %c0_i32_79 = arith.constant 0 : i32
    %151 = tpu.memref_slice %arg4[%140, %c0_i32_79] : memref<64x32xf32, #tpu.memory_space<any>> -> memref<1x32xf32, #tpu.memory_space<any>>
    %c0_i32_80 = arith.constant 0 : i32
    %152 = tpu.memref_slice %arg7[%137, %c0_i32_80] : memref<8x32xf32, #tpu.memory_space<vmem>> -> memref<1x32xf32, #tpu.memory_space<vmem>>
    %153 = tpu.memref_slice %arg8[%150] : memref<8x!tpu.dma_semaphore, #tpu.memory_space<semaphore_mem>> -> memref<1x!tpu.dma_semaphore, #tpu.memory_space<semaphore_mem>>
    %154 = tpu.memref_squeeze %153 : memref<1x!tpu.dma_semaphore, #tpu.memory_space<semaphore_mem>> -> memref<!tpu.dma_semaphore, #tpu.memory_space<semaphore_mem>>
    tpu.enqueue_dma source(%151 : memref<1x32xf32, #tpu.memory_space<any>>) target(%152 : memref<1x32xf32, #tpu.memory_space<vmem>>) target_semaphore(%154 : memref<!tpu.dma_semaphore, #tpu.memory_space<semaphore_mem>>)
    %c8_i32_81 = arith.constant 8 : i32
    %c0_i32_82 = arith.constant 0 : i32
    %c8_i32_83 = arith.constant 8 : i32
    %155 = arith.addi %c0_i32_82, %c8_i32_83 : i32
    %c1_i32_84 = arith.constant 1 : i32
    scf.for %arg9 = %c0_i32_82 to %155 step %c1_i32_84  : i32 {
      %c1_i32_92 = arith.constant 1 : i32
      %162 = arith.muli %arg9, %c1_i32_92 : i32
      %c0_i32_93 = arith.constant 0 : i32
      %163 = arith.addi %c0_i32_93, %162 : i32
      %c8_i32_94 = arith.constant 8 : i32
      %c0_i32_95 = arith.constant 0 : i32
      %164 = arith.cmpi eq, %c8_i32_94, %c0_i32_95 : i32
      %c1_i32_96 = arith.constant 1 : i32
      %165 = arith.select %164, %c1_i32_96, %c8_i32_94 : i32
      %166 = arith.remsi %163, %165 : i32
      %c0_i32_97 = arith.constant 0 : i32
      %167 = arith.cmpi ne, %166, %c0_i32_97 : i32
      %c0_i32_98 = arith.constant 0 : i32
      %168 = arith.cmpi slt, %166, %c0_i32_98 : i32
      %c0_i32_99 = arith.constant 0 : i32
      %169 = arith.cmpi slt, %165, %c0_i32_99 : i32
      %170 = arith.xori %168, %169 : i1
      %171 = arith.andi %170, %167 : i1
      %172 = arith.addi %166, %165 : i32
      %173 = arith.select %171, %172, %166 : i32
      %c0_i32_100 = arith.constant 0 : i32
      %c0_i32_101 = arith.constant 0 : i32
      %174 = tpu.memref_slice %arg4[%c0_i32_100, %c0_i32_101] : memref<64x32xf32, #tpu.memory_space<any>> -> memref<1x32xf32, #tpu.memory_space<any>>
      %c0_i32_102 = arith.constant 0 : i32
      %c0_i32_103 = arith.constant 0 : i32
      %175 = tpu.memref_slice %arg7[%c0_i32_102, %c0_i32_103] : memref<8x32xf32, #tpu.memory_space<vmem>> -> memref<1x32xf32, #tpu.memory_space<vmem>>
      %176 = tpu.memref_slice %arg8[%173] : memref<8x!tpu.dma_semaphore, #tpu.memory_space<semaphore_mem>> -> memref<1x!tpu.dma_semaphore, #tpu.memory_space<semaphore_mem>>
      %177 = tpu.memref_squeeze %176 : memref<1x!tpu.dma_semaphore, #tpu.memory_space<semaphore_mem>> -> memref<!tpu.dma_semaphore, #tpu.memory_space<semaphore_mem>>
      tpu.wait_dma2 semaphore(%177 : memref<!tpu.dma_semaphore, #tpu.memory_space<semaphore_mem>>) src(%174 : memref<1x32xf32, #tpu.memory_space<any>>) dst(%175 : memref<1x32xf32, #tpu.memory_space<vmem>>)
      %c8_i32_104 = arith.constant 8 : i32
      %178 = arith.addi %163, %c8_i32_104 : i32
      %c8_i32_105 = arith.constant 8 : i32
      %179 = arith.cmpi slt, %178, %c8_i32_105 : i32
      %180 = arith.extui %179 : i1 to i32
      %c0_i32_106 = arith.constant 0 : i32
      %181 = arith.cmpi ne, %180, %c0_i32_106 : i32
      scf.if %181 {
        %c8_i32_107 = arith.constant 8 : i32
        %182 = arith.addi %163, %c8_i32_107 : i32
        %183 = arith.addi %2, %182 : i32
        %184 = arith.index_cast %183 : i32 to index
        %185 = memref.load %arg2[%184] : memref<16xi32, #tpu.memory_space<smem>>
        %c8_i32_108 = arith.constant 8 : i32
        %c0_i32_109 = arith.constant 0 : i32
        %186 = arith.cmpi eq, %c8_i32_108, %c0_i32_109 : i32
        %c1_i32_110 = arith.constant 1 : i32
        %187 = arith.select %186, %c1_i32_110, %c8_i32_108 : i32
        %188 = arith.remsi %182, %187 : i32
        %c0_i32_111 = arith.constant 0 : i32
        %189 = arith.cmpi ne, %188, %c0_i32_111 : i32
        %c0_i32_112 = arith.constant 0 : i32
        %190 = arith.cmpi slt, %188, %c0_i32_112 : i32
        %c0_i32_113 = arith.constant 0 : i32
        %191 = arith.cmpi slt, %187, %c0_i32_113 : i32
        %192 = arith.xori %190, %191 : i1
        %193 = arith.andi %192, %189 : i1
        %194 = arith.addi %188, %187 : i32
        %195 = arith.select %193, %194, %188 : i32
        %c0_i32_114 = arith.constant 0 : i32
        %196 = tpu.memref_slice %arg4[%185, %c0_i32_114] : memref<64x32xf32, #tpu.memory_space<any>> -> memref<1x32xf32, #tpu.memory_space<any>>
        %c0_i32_115 = arith.constant 0 : i32
        %197 = tpu.memref_slice %arg7[%182, %c0_i32_115] : memref<8x32xf32, #tpu.memory_space<vmem>> -> memref<1x32xf32, #tpu.memory_space<vmem>>
        %198 = tpu.memref_slice %arg8[%195] : memref<8x!tpu.dma_semaphore, #tpu.memory_space<semaphore_mem>> -> memref<1x!tpu.dma_semaphore, #tpu.memory_space<semaphore_mem>>
        %199 = tpu.memref_squeeze %198 : memref<1x!tpu.dma_semaphore, #tpu.memory_space<semaphore_mem>> -> memref<!tpu.dma_semaphore, #tpu.memory_space<semaphore_mem>>
        tpu.enqueue_dma source(%196 : memref<1x32xf32, #tpu.memory_space<any>>) target(%197 : memref<1x32xf32, #tpu.memory_space<vmem>>) target_semaphore(%199 : memref<!tpu.dma_semaphore, #tpu.memory_space<semaphore_mem>>)
      } else {
      }
    }
    %c8_i32_85 = arith.constant 8 : i32
    %c0 = arith.constant 0 : index
    %c0_86 = arith.constant 0 : index
    %156 = vector.load %arg7[%c0, %c0_86] : memref<8x32xf32, #tpu.memory_space<vmem>>, vector<8x32xf32>
    %c0_87 = arith.constant 0 : index
    %c0_88 = arith.constant 0 : index
    %157 = vector.load %arg5[%c0_87, %c0_88] : memref<8x32xf32, #tpu.memory_space<vmem>>, vector<8x32xf32>
    %158 = arith.addf %156, %157 : vector<8x32xf32>
    %c0_89 = arith.constant 0 : index
    %c0_90 = arith.constant 0 : index
    %c0_91 = arith.constant 0 : index
    %159 = vector.load %arg6[%c0_89, %c0_90, %c0_91] : memref<1x8x32xf32, #tpu.memory_space<vmem>>, vector<1x8x32xf32>
    %160 = vector.shape_cast %159 : vector<1x8x32xf32> to vector<8x32xf32>
    %161 = vector.shape_cast %158 : vector<8x32xf32> to vector<1x8x32xf32>
    tpu.vector_store %arg6[%c0_89, %c0_90, %c0_91], %161 {strides = array<i32>} : memref<1x8x32xf32, #tpu.memory_space<vmem>>, vector<1x8x32xf32>,
    return
  }
  func.func @transform_1(%arg0: i32, %arg1: i32, %arg2: memref<16xi32, #tpu.memory_space<smem>>, %arg3: memref<1xi32, #tpu.memory_space<smem>>) -> (i32, i32) {
    %c0_i32 = arith.constant 0 : i32
    %c0_i32_0 = arith.constant 0 : i32
    return %arg0, %c0_i32 : i32, i32
  }
  func.func @transform_2(%arg0: i32, %arg1: i32, %arg2: memref<16xi32, #tpu.memory_space<smem>>, %arg3: memref<1xi32, #tpu.memory_space<smem>>) -> (i32, i32, i32) {
    %c0_i32 = arith.constant 0 : i32
    %c0_i32_0 = arith.constant 0 : i32
    return %arg1, %arg0, %c0_i32 : i32, i32, i32
  }
}

</mosaic_0001>

<bundles_post_ra>
// kernel: tpu_custom_call.1
= control target key start
LH: loop header
LB: loop body
LE: loop exit
PB: predicated region body
PF: predicated region fallthrough
CT: control target
= control target key end

     0   :  { %s1286_s0 = inlined_call_operand.vmem [shape: s32[16], index: 0, kind: input, shape index: {}]   ;;  %s1287_s1 = inlined_call_operand.<no memory space> [shape: s32[1], index: 1, kind: input, shape index: {}]   ;;  %s1288_s2 = inlined_call_operand.vmem [shape: f32[64,32], index: 2, kind: input, shape index: {}]   ;;  %s1289_s3 = inlined_call_operand.vmem [shape: f32[8,32], index: 3, kind: input, shape index: {}]   ;;  %s1290_s4 = inlined_call_operand.hbm [shape: f32[2,8,32], index: 4, kind: output, shape index: {}]  }
   0x1   :  { %s9_s17 = sshll.u32 %s1286_s0, 4  ;;  %s10_s17 = int_to_ptr.vmem [resolvable:$true] %s9_s17 }
   0x2   :  { %s988_s18 = scalar_lea.vmem %s10_s17, 16  ;;  %p993_p1 = scmp.lt.s32.totalorder %s10_s17, %s10_s17 }
   0x3   :  { %p989_p0 = scmp.ne.s32.totalorder %s10_s17, %s988_s18  ;;  %p994_p2 = scmp.lt.s32.totalorder %s988_s18, %s988_s18 }
   0x5   :  { %p995_p3 = por %p994_p2, %p993_p1 }
   0x7   :  { %p996_p4 = pnand %p995_p3, %p989_p0 }
   0x9   :  { %999 = shalt.err (!%p996_p4)  }
   0xa   :  { %s1090_s1 = smov [#allocation5]  }
   0xb   :  { %12 = dma.vmem_to_smem %s10_s17, 16, %s1090_s1, [#allocation4] }
   0xc   :  { %1054 = dma.done.wait [#allocation4], 16 }
   0xd   :  { %1055 = vsyncadd [#allocation4], 4294967280 }
   0xe   :  { %15 = sfence }
   0xf   :  { %16 = vsyncpa [#allocation8], 0 }
  0x10   :  { %18 = vsyncpa [#allocation8 + $0x1], 0  ;;  %s1120_s19 = smov 0   ;;  %s1122_s20 = smov 0  }
  0x11   :  { %s1124_s0 = smov 0   ;;  %s1126_s21 = smov 0  }
  0x12   :  { %s1128_s22 = smov 0   ;;  %s1130_s23 = smov 0  }
  0x13 LB: > { %s896_s24 = sadd.s32 4294967295, %s1084_s23   ;;  %s897_s25 = sadd.s32 4294967294, %s1084_s23   ;;  %s1084_s23 = sphi %s1130_s23, %s24_s23   ;;  %s1080_s22 = sphi %s1128_s22, %s1297_s22   ;;  %s1076_s21 = sphi %s1126_s21, %s1296_s21   ;;  %s1072_s0 = sphi %s1124_s0, %s1295_s0   ;;  %s1068_s20 = sphi %s1122_s20, %s1294_s20   ;;  %s1064_s19 = sphi %s1120_s19, %s1293_s19  }
  0x14   : > { %s33_s26 = sadd.s32 1, %s1080_s22  ;;  %s71_s27 = sadd.s32 1, %s1072_s0 }
  0x15   : > { %p34_p5 = scmp.ge.s32.totalorder %s33_s26, 2  ;;  %p81_p6 = scmp.ne.s32.totalorder %s1072_s0, %s1068_s20 }
  0x16   : > { %p82_p7 = scmp.eq.s32.totalorder %s896_s24, 1  ;;  %p87_p8 = scmp.ne.s32.totalorder %s1068_s20, %s1064_s19 }
  0x17   : > { %s1299_s26 = smov (%p34_p5, %s33_s26), 0  ;;  %p88_p10 = scmp.eq.s32.totalorder %s897_s25, 1 }
  0x18   : > { %p1160_p9 = por %p82_p7, %p81_p6  ;;  %s66_s29 = ssub.s32 %s1080_s22, %s1299_s26 }
  0x19   : > { %p900_p11 = scmp.ge.s32.totalorder %s1084_s23, 1  ;;  %p69_p12 = scmp.eq.s32.totalorder %s66_s29, 0 }
  0x1a   : > { %p1167_p13 = por %p88_p10, %p87_p8  ;;  %p113_p0 = scmp.lt.s32.totalorder %s1084_s23, 3 }
  0x1b   : > { %s1173_s5 = scalar_select %p69_p12, %s1072_s0, %s71_s27  }
  0x1c   : > { %p114_p1 = pnand %p900_p11, %p113_p0 }
  0x1d   : > { %s129_s6 = sand.u32 (!%p114_p1), 1, %s1068_s20   ;;  %s1177_s7 = sshll.u32 (!%p114_p1), %s1076_s21, 3 }
  0x1e   : > { %117 = sbr.rel (%p114_p1) target bundleno = 161 (0xa1), region = 24  ;;  %s1181_s8 = sshll.u32 (!%p114_p1), %s129_s6, 3 }
  0x1f   : > { %s139_s9 = sld [smem:[#allocation5 + %s1177_s7]] (!%p114_p1)  ;;  %s131_s13 = scalar_lea.vmem (!%p114_p1), [#allocation7], %s1181_s8 }
  0x25   : > { %s140_s12 = scalar_lea.vmem %s1288_s2, %s139_s9 }
  0x26   : > { %v159_v0 = vld [vmem:[%s140_s12] sm:$0x1] }
  0x27   : > { %160 = vst [vmem:[#allocation2] sm:$0x1] %v159_v0 }
  0x28   : > { %186 = vsyncadd [#allocation3], 16  ;;  %s187_s14 = sadd.s32 1, %s1177_s7 }
  0x29   : > { %s188_s15 = sld [smem:[#allocation5 + %s187_s14]] }
  0x2f   : > { %s189_s18 = scalar_lea.vmem %s1288_s2, %s188_s15 }
  0x30   : > { %v210_v1 = vld [vmem:[%s189_s18] sm:$0x1] }
  0x31   : > { %211 = vst [vmem:[#allocation2 + $0x1] sm:$0x1] %v210_v1 }
  0x32   : > { %237 = vsyncadd [#allocation3 + $0x1], 16  ;;  %s238_s1 = sadd.s32 2, %s1177_s7 }
  0x33   : > { %s239_s24 = sld [smem:[#allocation5 + %s238_s1]] }
  0x39   : > { %s240_s29 = scalar_lea.vmem %s1288_s2, %s239_s24 }
  0x3a   : > { %v261_v2 = vld [vmem:[%s240_s29] sm:$0x1] }
  0x3b   : > { %262 = vst [vmem:[#allocation2 + $0x2] sm:$0x1] %v261_v2 }
  0x3c   : > { %288 = vsyncadd [#allocation3 + $0x2], 16  ;;  %s289_s9 = sadd.s32 3, %s1177_s7 }
  0x3d   : > { %s290_s10 = sld [smem:[#allocation5 + %s289_s9]] }
  0x43   : > { %s291_s14 = scalar_lea.vmem %s1288_s2, %s290_s10 }
  0x44   : > { %v312_v3 = vld [vmem:[%s291_s14] sm:$0x1] }
  0x45   : > { %313 = vst [vmem:[#allocation2 + $0x3] sm:$0x1] %v312_v3 }
  0x46   : > { %339 = vsyncadd [#allocation3 + $0x3], 16  ;;  %s340_s15 = sadd.s32 4, %s1177_s7 }
  0x47   : > { %s341_s16 = sld [smem:[#allocation5 + %s340_s15]] }
  0x4d   : > { %s342_s1 = scalar_lea.vmem %s1288_s2, %s341_s16 }
  0x4e   : > { %v363_v4 = vld [vmem:[%s342_s1] sm:$0x1] }
  0x4f   : > { %364 = vst [vmem:[#allocation2 + $0x4] sm:$0x1] %v363_v4 }
  0x50   : > { %390 = vsyncadd [#allocation3 + $0x4], 16  ;;  %s391_s24 = sadd.s32 5, %s1177_s7 }
  0x51   : > { %s392_s25 = sld [smem:[#allocation5 + %s391_s24]] }
  0x57   : > { %s393_s9 = scalar_lea.vmem %s1288_s2, %s392_s25 }
  0x58   : > { %v414_v5 = vld [vmem:[%s393_s9] sm:$0x1] }
  0x59   : > { %415 = vst [vmem:[#allocation2 + $0x5] sm:$0x1] %v414_v5 }
  0x5a   : > { %441 = vsyncadd [#allocation3 + $0x5], 16  ;;  %s442_s10 = sadd.s32 6, %s1177_s7 }
  0x5b   : > { %s443_s11 = sld [smem:[#allocation5 + %s442_s10]] }
  0x61   : > { %s444_s15 = scalar_lea.vmem %s1288_s2, %s443_s11 }
  0x62   : > { %v465_v6 = vld [vmem:[%s444_s15] sm:$0x1] }
  0x63   : > { %466 = vst [vmem:[#allocation2 + $0x6] sm:$0x1] %v465_v6 }
  0x64   : > { %492 = vsyncadd [#allocation3 + $0x6], 16  ;;  %s493_s16 = sadd.s32 7, %s1177_s7 }
  0x65   : > { %s494_s17 = sld [smem:[#allocation5 + %s493_s16]] }
  0x6b   : > { %s495_s24 = scalar_lea.vmem %s1288_s2, %s494_s17 }
  0x6c   : > { %v516_v7 = vld [vmem:[%s495_s24] sm:$0x1] }
  0x6d   : > { %517 = vst [vmem:[#allocation2 + $0x7] sm:$0x1] %v516_v7 }
  0x6e   : > { %543 = vsyncadd [#allocation3 + $0x7], 16  ;;  %s1216_s25 = smov 0  }
  0x6f LB: >> { %p550_p2 = scmp.lt.s32.totalorder %s1088_s25, 0  ;;  %s551_s27 = ssub.s32 0, %s1088_s25  ;;  %s1088_s25 = sphi %s1216_s25, %s549_s25  }
  0x70   : >> { %s903_s29 = smin.u32 %s1088_s25, %s551_s27 }
  0x71   : >> { %s553_s9 = sand.u32 7, %s903_s29  }
  0x72   : >> { %s554_s10 = ssub.s32 0, %s553_s9 }
  0x73   : >> { %s1301_s10 = smov (!%p550_p2, %s554_s10), %s553_s9 }
  0x74   : >> { %p905_p3 = scmp.lt.s32.totalorder %s1301_s10, 0  ;;  %s560_s11 = sadd.s32 8, %s1301_s10 }
  0x76   : >> { %s1303_s11 = smov (!%p905_p3, %s560_s11), %s1301_s10 }
  0x77   : >> { %s562_s12 = scalar_lea.sflag [#allocation3], %s1303_s11 }
  0x78   : >> { %1056 = dma.done.wait %s562_s12, 16 }
  0x79   : >> { %1057 = vsyncadd %s562_s12, 4294967280  ;;  %s566_s14 = sadd.s32 8, %s1088_s25 }
  0x7a   : >> { %p906_p4 = scmp.ge.s32.totalorder %s566_s14, 8 }
  0x7b   : >> { %s571_s15 = sadd.s32 (!%p906_p4), %s1177_s7, %s566_s14  ;;  %p573_p5 = scmp.lt.s32.totalorder (!%p906_p4), %s566_s14, 0 }
  0x7c   : >> { %570 = sbr.rel (%p906_p4) target bundleno = 135 (0x87), region = 275  ;;  %s572_s16 = sld [smem:[#allocation5 + %s571_s15]] (!%p906_p4) }
  0x7d   : >> { %s574_s17 = ssub.s32 (!%p906_p4), 0, %s566_s14  ;;  %s772_s11 = scalar_lea.vmem (!%p906_p4), [#allocation2], %s1088_s25 }
  0x7e   : >> { %s907_s18 = smin.u32 (!%p906_p4), %s574_s17, %s566_s14 }
  0x7f   : >> { %s576_s1 = sand.u32 (!%p906_p4), 7, %s907_s18  }
  0x80   : >> { %s577_s24 = ssub.s32 (!%p906_p4), 0, %s576_s1 }
  0x81   : >> { %s1305_s24 = smov (!%p573_p5, %s577_s24), %s576_s1 }
  0x82   : >> { %p909_p6 = scmp.lt.s32.totalorder %s1305_s24, 0  ;;  %s583_s27 = sadd.s32 8, %s1305_s24 }
  0x83   : >> { %s585_s10 = scalar_lea.vmem %s1288_s2, %s572_s16 }
  0x84   : >> { %s1307_s27 = smov (!%p909_p6, %s583_s27), %s1305_s24  ;;  %v606_v8 = vld [vmem:[%s585_s10] sm:$0x1] }
  0x85   : >> { %911 = vst [vmem:[%s772_s11 + $0x8] sm:$0x1] %v606_v8  ;;  %s587_s12 = scalar_lea.sflag [#allocation3], %s1307_s27 }
  0x86   : >> { %633 = vsyncadd %s587_s12, 16 }
  0x87 PF: >> { %s549_s25 = sadd.s32 1, %s1088_s25  }
  0x88   : >> { %p546_p7 = scmp.ge.s32.totalorder %s549_s25, 8  }
  0x89   : > { %v635_v10 = vld [vmem:[%s1289_s3] sm:$0xff] (%p546_p7)  ;;  %vm637_vm0 = vcmask (%p546_p7), 261120   ;;  %s913_s16 = sshll.u32 (%p546_p7), %s1076_s21, 7  ;;  %s654_s25 = sshll.u32 (%p546_p7), %s131_s13, 4  ;;  %s655_s25 = int_to_ptr.vmem [resolvable:$true] %s654_s25 }
  0x8a   : > { %548 = sbr.rel (!%p546_p7) target bundleno = 111 (0x6f), region = 463  ;;  %s1240_s1 = scalar_lea.hbm (%p546_p7), %s1290_s4, %s913_s16 }
  0x8b   : > { %s640_s7 = scalar_lea.sflag (%p546_p7), [#allocation8], %s129_s6  ;;  %s1000_s24 = scalar_lea.vmem (%p546_p7), %s655_s25, 128 }
  0x8c   : > { %v634_v9 = vld [vmem:[#allocation2] sm:$0xff] (%p546_p7)  ;;  %p1001_p8 = scmp.ne.s32.totalorder (%p546_p7), %s655_s25, %s1000_s24  ;;  %s1091_s27 = smov (%p546_p7), [#allocation7]  }
  0x8d   : > { %v636_v11 = vadd.f32 (%p546_p7), %v635_v10, %v634_v9  ;;  %s1004_s21 = sshll.u32 (%p546_p7), %s1091_s27, 4  ;;  %s1005_s21 = int_to_ptr.vmem [resolvable:$false] %s1004_s21 }
  0x8e   : > { %p1002_p10 = pnand (%p546_p7), %p1001_p8, %p1160_p9  ;;  %s1006_s29 = scalar_lea.vmem (%p546_p7), %s1005_s21, 256 }
  0x8f   : > { %638 = vst.msk [vmem:[%s131_s13] sm:$0xff] %vm637_vm0, %v636_v11  ;;  %p1007_p12 = scmp.lt.s32.totalorder %s655_s25, %s1005_s21  ;;  %p1008_p0 = scmp.lt.s32.totalorder %s1006_s29, %s1000_s24 }
  0x90   : > { %p1003_p11 = pneg %p1002_p10 }
  0x91   : > { %p1009_p1 = por %p1008_p0, %p1007_p12 }
  0x93   : > { %p1010_p2 = pnand %p1009_p1, %p1003_p11 }
  0x95   : > { %1013 = shalt.err (!%p1010_p2)
}
  0x96   : > { %s1014_s8 = scalar_lea.hbm %s1240_s1, 128  ;;  %s1018_s9 = scalar_lea.hbm %s1290_s4, 256 }
  0x97   : > { %p1015_p3 = scmp.ne.s32.totalorder %s1240_s1, %s1014_s8  ;;  %p1019_p6 = scmp.lt.s32.totalorder %s1240_s1, %s1290_s4 }
  0x98   : > { %p1020_p7 = scmp.lt.s32.totalorder %s1018_s9, %s1014_s8 }
  0x99   : > { %p1016_p4 = pnand %p1015_p3, %p1160_p9 }
  0x9a   : > { %p1021_p8 = por %p1020_p7, %p1019_p6 }
  0x9b   : > { %p1017_p5 = pneg %p1016_p4 }
  0x9d   : > { %p1022_p10 = pnand %p1021_p8, %p1017_p5 }
  0x9f   : > { %1025 = shalt.err (!%p1022_p10)
}
  0xa0   : > { %924 = dma.vmem_to_hbm [thread:$0]  (%p1160_p9), %s655_s25, 128, %s1240_s1, %s640_s7  }
  0xa1 PF: > { %p930_p11 = scmp.ge.s32.totalorder %s1084_s23, 2  ;;  %s666_s12 = sand.u32 1, %s1064_s19  }
  0xa2   : > { %s667_s14 = scalar_lea.sflag [#allocation8], %s666_s12 }
  0xa3   : > { %p927_p12 = pnand %p930_p11, %p1167_p13 }
  0xa5   : > { %p928_p0 = pneg %p927_p12 }
  0xa7   : > { %1059 = dma.done.wait (%p928_p0), %s667_s14, 128  }
  0xa8   : > { %1061 = vsyncadd (%p928_p0), %s667_s14, 4294967168  ;;  %s24_s23 = sadd.s32 1, %s1084_s23   ;;  %s1293_s19 = smov %s1068_s20 }
  0xa9   : > { %p21_p1 = scmp.ge.s32.totalorder %s24_s23, 4   ;;  %s1294_s20 = smov %s1072_s0 }
  0xaa   : > { %s1295_s0 = smov %s1173_s5  ;;  %s1296_s21 = smov %s1080_s22 }
  0xab   : > { %s1297_s22 = smov %s1299_s26  ;;  %23 = sbr.rel (!%p21_p1) target bundleno = 19 (0x13), region = 474 }
  0xb0   :  { %672 = vsyncpa [#allocation8], 1 }
  0xb1   :  { %674 = vsyncpa [#allocation8 + $0x1], 1 }
  0xb2   :  { %675 = vsyncmov [#allocation3] }
  0xb5   :  { %s676_s28 = vpop.sfrf %675 }
  0xb6   :  { %p916_p9 = scmp.ne.s32.totalorder %s676_s28, 0 }
  0xb8   :  { %680 = shalt.err (%p916_p9)  }
  0xb9   :  { %682 = vsyncmov [#allocation3 + $0x1] }
  0xbc   :  { %s683_s30 = vpop.sfrf %682 }
  0xbd   :  { %p917_p13 = scmp.ne.s32.totalorder %s683_s30, 0 }
  0xbf   :  { %687 = shalt.err (%p917_p13)  }
  0xc0   :  { %689 = vsyncmov [#allocation3 + $0x2] }
  0xc3   :  { %s690_s15 = vpop.sfrf %689 }
  0xc4   :  { %p918_p2 = scmp.ne.s32.totalorder %s690_s15, 0 }
  0xc6   :  { %694 = shalt.err (%p918_p2)  }
  0xc7   :  { %696 = vsyncmov [#allocation3 + $0x3] }
  0xca   :  { %s697_s5 = vpop.sfrf %696 }
  0xcb   :  { %p919_p3 = scmp.ne.s32.totalorder %s697_s5, 0 }
  0xcd   :  { %701 = shalt.err (%p919_p3)  }
  0xce   :  { %703 = vsyncmov [#allocation3 + $0x4] }
  0xd1   :  { %s704_s23 = vpop.sfrf %703 }
  0xd2   :  { %p920_p4 = scmp.ne.s32.totalorder %s704_s23, 0 }
  0xd4   :  { %708 = shalt.err (%p920_p4)  }
  0xd5   :  { %710 = vsyncmov [#allocation3 + $0x5] }
  0xd8   :  { %s711_s2 = vpop.sfrf %710 }
  0xd9   :  { %p921_p5 = scmp.ne.s32.totalorder %s711_s2, 0 }
  0xdb   :  { %715 = shalt.err (%p921_p5)  }
  0xdc   :  { %717 = vsyncmov [#allocation3 + $0x6] }
  0xdf   :  { %s718_s3 = vpop.sfrf %717 }
  0xe0   :  { %p922_p6 = scmp.ne.s32.totalorder %s718_s3, 0 }
  0xe2   :  { %722 = shalt.err (%p922_p6)  }
  0xe3   :  { %724 = vsyncmov [#allocation3 + $0x7] }
  0xe6   :  { %s725_s4 = vpop.sfrf %724 }
  0xe7   :  { %p923_p7 = scmp.ne.s32.totalorder %s725_s4, 0 }
  0xe9   :  { %729 = shalt.err (%p923_p7)  }

</bundles_post_ra>
